<compile_context>
chip_gen: v7x
topology: tpu7x:2x2x1
jax: 0.10.0
libtpu: 0.0.40
codegen_flags: <defaults>
</compile_context>

<pallas_src>
import functools

import numpy as np
import jax
import jax.numpy as jnp
from jax.experimental import pallas as pl
from jax.experimental.pallas import tpu as pltpu


# ----------------------------------------------------------------------------
# __init__-time glue (pure python, mirrors A3LALoss.get_region_points)
# ----------------------------------------------------------------------------
def _get_region_points(cls_num_list, num_experts):
    region_num = int(sum(cls_num_list)) // (num_experts - 1)
    sort_list = sorted(int(v) for v in cls_num_list)
    region_points = []
    now_sum = 0
    for v in sort_list:
        now_sum += v
        if now_sum > region_num:
            region_points.append(v)
            now_sum = 0
    region_points = list(reversed(region_points))
    region_left_right = []
    for i in range(len(region_points)):
        if i == 0:
            region_left_right.append([region_points[i], max(int(v) for v in cls_num_list)])
        else:
            region_left_right.append([region_points[i], region_points[i - 1]])
    region_left_right.append([0, region_points[-1]])
    return region_left_right


# ----------------------------------------------------------------------------
# Pallas kernel: ONE invocation, all experts batched on the leading axis
# ----------------------------------------------------------------------------
def _a3la_kernel(feat_ref, lt_ref, slab_ref, out_ref, *, region_bounds, tau, T):
    """feat_ref : [E, B, D]   f32  per-expert penultimate features
       lt_ref   : [E, B, C+1] f32  lanes 0..C-1 = expert logits, lane C = theta_yi
       slab_ref : [B+2, C]    f32  rows 0..B-1 = one-hot, row B = cls_num, row B+1 = log(prior)
       out_ref  : [E+1, C]    f32  rows 0..E-1 = energy weights, row E = loss (broadcast)"""
    E, B, Cp1 = lt_ref.shape
    C = Cp1 - 1
    R = len(region_bounds)

    feats = feat_ref[...]                          # [E, B, D]
    logits = lt_ref[:, :, 0:C]                     # [E, B, C]
    theta = lt_ref[:, :, C:C + 1]                  # [E, B, 1]

    onehot = slab_ref[0:B, :]                      # [B, C]
    cls_num = slab_ref[B:B + 1, :]                 # [1, C]
    log_prior = slab_ref[B + 1:B + 2, :].reshape(1, 1, C)

    # --- expert-invariant precompute (computed once) -------------------------
    onehot3 = onehot.reshape(1, B, C)
    counts3 = jnp.sum(onehot, axis=0, keepdims=True).reshape(1, 1, C)    # [1,1,C]
    present3 = counts3 > 0.0

    target_num = jnp.sum(onehot * cls_num, axis=1, keepdims=True)        # [B, 1]
    masks = jnp.concatenate(
        [((target_num > lo) & (target_num <= hi)).astype(jnp.float32)
         for (lo, hi) in region_bounds], axis=1)                         # [B, R]
    region_counts3 = jnp.sum(masks, axis=0, keepdims=True).reshape(1, 1, R)
    covered3 = jnp.sum(masks, axis=1, keepdims=True).reshape(1, B, 1)    # regions disjoint
    masks3 = masks.reshape(1, B, R)

    # --- energy = -T * logsumexp(feat / T, -1): one batched EUP chain --------
    z = feats * (1.0 / T)
    zmax = jnp.max(z, axis=-1, keepdims=True)
    lse = zmax + jnp.log(jnp.sum(jnp.exp(z - zmax), axis=-1, keepdims=True))
    energy = -T * lse                                                     # [E, B, 1]

    # --- per-class energy mean -> 1 + softmax calibration weight -------------
    class_sum = jnp.sum(onehot3 * energy, axis=1, keepdims=True)          # [E, 1, C]
    class_mean = class_sum / jnp.maximum(counts3, 1.0)
    max_energy = jnp.max(jnp.where(present3, class_mean, -jnp.inf),
                         axis=-1, keepdims=True)                          # [E, 1, 1]
    cal_w = jnp.where(present3, class_mean, 0.0)
    # exact-zero replacement mirrors the torch code (calibrated_weights == 0)
    cal_w = jnp.where(cal_w == 0.0, max_energy, cal_w)
    wmax = jnp.max(cal_w, axis=-1, keepdims=True)
    wexp = jnp.exp(cal_w - wmax)
    energy_weight = 1.0 + wexp / jnp.sum(wexp, axis=-1, keepdims=True)    # [E, 1, C]

    # --- angular (delta_theta) reweighting of the one-hot target -------------
    sums = jnp.sum(theta * masks3, axis=1, keepdims=True)                 # [E, 1, R]
    means = sums / jnp.maximum(region_counts3, 1.0)
    mean_sel = jnp.sum(masks3 * means, axis=-1, keepdims=True)            # [E, B, 1]
    delta = jnp.where(covered3 > 0.0, theta - mean_sel, 0.0)
    delta = jnp.where(delta < 0.0, 1.0, 1.0 + delta)                      # [E, B, 1]

    # --- prior-calibrated logit adjustment + log-softmax NLL -----------------
    log_calib = jnp.log(jnp.exp(energy_weight * log_prior) + 1e-9)        # [E, 1, C]
    if tau != 1.0:
        # tau only scales the last expert's calibration (cold path: E <= 2)
        log_calib = jnp.concatenate(
            [log_calib[0:E - 1], log_calib[E - 1:E] * tau], axis=0)
    adj = logits + log_calib                                              # [E, B, C]
    amax = jnp.max(adj, axis=-1, keepdims=True)
    alse = amax + jnp.log(jnp.sum(jnp.exp(adj - amax), axis=-1, keepdims=True))
    picked = jnp.sum((adj - alse) * onehot3, axis=-1, keepdims=True)      # [E, B, 1]

    per_expert = jnp.sum(picked * delta, axis=1, keepdims=True)           # [E, 1, 1]
    loss_11 = (-1.0 / B) * jnp.sum(per_expert, axis=0, keepdims=True)[0]  # [1, 1]

    # --- single merged output slab --------------------------------------------
    for e in range(E):
        out_ref[e:e + 1, :] = energy_weight[e]                            # [1, C]
    out_ref[E:E + 1, :] = jnp.broadcast_to(loss_11, (1, C))


# ----------------------------------------------------------------------------
# Wrapper (layout + tiny arccos glue), intended to run under jax.jit
# ----------------------------------------------------------------------------
def a3la_loss_pallas(output_features, expert_logits, target, cls_num_list,
                     num_experts=3, s=30.0, tau=3.0, T=1.0):
    cls_num = np.asarray(cls_num_list, dtype=np.float64)
    B = output_features.shape[0]
    E = num_experts
    C = expert_logits.shape[-1]
    D = output_features.shape[1] // E            # = 64, mirrors torch.split(..., 64, 1)
    tau_eff = float(tau) if E <= 2 else 1.0

    log_prior = np.log(cls_num / cls_num.sum()).reshape(1, C)
    region_bounds = tuple((float(lo), float(hi))
                          for lo, hi in _get_region_points(cls_num_list, E))

    target = jnp.asarray(target, jnp.int32).reshape(B)
    feats = jnp.transpose(jnp.asarray(output_features, jnp.float32).reshape(B, E, D),
                          (1, 0, 2))                                      # [E, B, D]
    logits = jnp.asarray(expert_logits, jnp.float32)                      # [E, B, C]

    # TODO(synk): torch.acos has no guaranteed Mosaic lowering; theta_yi (tiny
    # [E, B, 1]) is computed here under the caller's jit and packed as an extra
    # lane of the logits operand.  Clamp keeps |w_yi| > s from producing NaN.
    onehot = jax.nn.one_hot(target, C, dtype=jnp.float32)                 # [B, C]
    idx = jnp.broadcast_to(target.reshape(1, B, 1), (E, B, 1))
    w_yi = jnp.take_along_axis(logits, idx, axis=2)                       # [E, B, 1]
    theta = jnp.arccos(jnp.clip(w_yi / s, -1.0, 1.0)).astype(jnp.float32)

    logits_theta = jnp.concatenate([logits, theta], axis=2)               # [E, B, C+1]
    slab = jnp.concatenate(
        [onehot,
         jnp.asarray(cls_num.reshape(1, C), jnp.float32),
         jnp.asarray(log_prior, jnp.float32)], axis=0)                    # [B+2, C]

    kernel = functools.partial(_a3la_kernel, region_bounds=region_bounds,
                               tau=tau_eff, T=float(T))

    out = pl.pallas_call(
        kernel,
        in_specs=[
            pl.BlockSpec(memory_space=pltpu.MemorySpace.VMEM),   # features     [E, B, D]
            pl.BlockSpec(memory_space=pltpu.MemorySpace.VMEM),   # logits+theta [E, B, C+1]
            pl.BlockSpec(memory_space=pltpu.MemorySpace.VMEM),   # onehot / cls_num / log-prior
        ],
        out_specs=pl.BlockSpec(memory_space=pltpu.MemorySpace.VMEM),
        out_shape=jax.ShapeDtypeStruct((E + 1, C), jnp.float32),
    )(feats, logits_theta, slab)

    return out[E, 0], out[0:E, :]


# ----------------------------------------------------------------------------
# Pure-JAX reference (mirrors the PyTorch forward) for validation
# ----------------------------------------------------------------------------
def a3la_loss_ref(output_features, expert_logits, target, cls_num_list,
                  num_experts=3, s=30.0, tau=3.0, T=1.0):
    cls_num = np.asarray(cls_num_list)
    B = output_features.shape[0]
    E = num_experts
    C = expert_logits.shape[-1]
    D = output_features.shape[1] // E
    tau_eff = tau if E <= 2 else 1.0
    prior = jnp.asarray(cls_num / cls_num.sum(), jnp.float32)
    region_points = _get_region_points(cls_num_list, E)
    target_num = jnp.asarray(cls_num, jnp.int32)[target]
    masks = [(target_num > region_points[i][0]) & (target_num <= region_points[i][1])
             for i in range(len(region_points))]
    onehot = jax.nn.one_hot(target, C, dtype=jnp.float32)
    loss = 0.0
    weights = []
    for ind in range(E):
        feats = output_features[:, ind * D:(ind + 1) * D]
        logits = expert_logits[ind]
        energy = -T * jax.scipy.special.logsumexp(feats / T, axis=1)
        counts = onehot.sum(axis=0)
        cmean = (onehot * energy[:, None]).sum(axis=0) / jnp.maximum(counts, 1.0)
        cal_w = jnp.where(counts > 0, cmean, 0.0)
        max_e = jnp.max(jnp.where(counts > 0, cmean, -jnp.inf))
        cal_w = jnp.where(cal_w == 0.0, max_e, cal_w)
        energy_weight = 1.0 + jax.nn.softmax(cal_w)
        weights.append(energy_weight)
        w_yi = (onehot * logits).sum(axis=1)
        theta = jnp.arccos(jnp.clip(w_yi / s, -1.0, 1.0))
        delta = jnp.zeros_like(theta)
        for i in range(len(region_points)):
            m = masks[i]
            mean_theta = jnp.sum(theta * m) / jnp.maximum(jnp.sum(m), 1)
            delta = jnp.where(m, theta - mean_theta, delta)
        delta = jnp.where(delta < 0.0, 1.0, 1.0 + delta)
        oh = onehot * delta[:, None]
        prior_calib = prior ** energy_weight
        scale = tau_eff if ind == E - 1 else 1.0
        adj = logits + jnp.log(prior_calib + 1e-9) * scale
        log_sm = jax.nn.log_softmax(adj, axis=1)
        loss = loss + (-jnp.sum(log_sm * oh, axis=1)).mean()
    return loss, jnp.stack(weights)


if __name__ == "__main__":
    B, C, E, D = 16, 8, 3, 64
    s, tau, T = 30.0, 3.0, 1.0
    cls_num_list = [100, 60, 30, 20, 10, 8, 6, 4]   # deterministic "parameters"

    key = jax.random.PRNGKey(0)
    k1, k2, k3 = jax.random.split(key, 3)
    output_features = jax.random.normal(k1, (B, E * D), dtype=jnp.float32)
    expert_logits = jax.random.normal(k2, (E, B, C), dtype=jnp.float32)
    target = jax.random.randint(k3, (B,), 0, C, dtype=jnp.int32)

    loss_fn = jax.jit(functools.partial(a3la_loss_pallas,
                                        cls_num_list=tuple(cls_num_list),
                                        num_experts=E, s=s, tau=tau, T=T))
    loss, weights = loss_fn(output_features, expert_logits, target)
    loss = jax.block_until_ready(loss)
    weights = jax.block_until_ready(weights)

    loss_ref, weights_ref = a3la_loss_ref(output_features, expert_logits, target,
                                          cls_num_list, num_experts=E, s=s, tau=tau, T=T)
    assert bool(jnp.isfinite(loss))
    np.testing.assert_allclose(np.asarray(loss), np.asarray(loss_ref), rtol=1e-4, atol=1e-5)
    np.testing.assert_allclose(np.asarray(weights), np.asarray(weights_ref), rtol=1e-4, atol=1e-5)
    print("KERNEL_OK")
</pallas_src>

<mosaic_0001>
module attributes {stable_mosaic.version = 11 : i64} {
  func.func @_a3la_kernel(%arg0: memref<3x16x64xf32, #tpu.memory_space<vmem>>, %arg1: memref<3x16x9xf32, #tpu.memory_space<vmem>>, %arg2: memref<18x8xf32, #tpu.memory_space<vmem>>, %arg3: memref<4x8xf32, #tpu.memory_space<vmem>>) attributes {dimension_semantics = [], scalar_prefetch = 0 : i64, scratch_operands = 0 : i64, tpu.core_type = #tpu.core_type<tc>} {
    %c0 = arith.constant 0 : index
    %c0_0 = arith.constant 0 : index
    %c0_1 = arith.constant 0 : index
    %0 = vector.load %arg0[%c0, %c0_0, %c0_1] : memref<3x16x64xf32, #tpu.memory_space<vmem>>, vector<3x16x64xf32>
    %c0_2 = arith.constant 0 : index
    %c0_3 = arith.constant 0 : index
    %c0_4 = arith.constant 0 : index
    %1 = vector.load %arg1[%c0_2, %c0_3, %c0_4] : memref<3x16x9xf32, #tpu.memory_space<vmem>>, vector<3x16x8xf32>
    %c0_5 = arith.constant 0 : index
    %c0_6 = arith.constant 0 : index
    %c8 = arith.constant 8 : index
    %2 = vector.load %arg1[%c0_5, %c0_6, %c8] : memref<3x16x9xf32, #tpu.memory_space<vmem>>, vector<3x16x1xf32>
    %c0_7 = arith.constant 0 : index
    %c0_8 = arith.constant 0 : index
    %3 = vector.load %arg2[%c0_7, %c0_8] : memref<18x8xf32, #tpu.memory_space<vmem>>, vector<16x8xf32>
    %c16 = arith.constant 16 : index
    %c0_9 = arith.constant 0 : index
    %4 = vector.load %arg2[%c16, %c0_9] : memref<18x8xf32, #tpu.memory_space<vmem>>, vector<1x8xf32>
    %c17 = arith.constant 17 : index
    %c0_10 = arith.constant 0 : index
    %5 = vector.load %arg2[%c17, %c0_10] : memref<18x8xf32, #tpu.memory_space<vmem>>, vector<1x8xf32>
    %6 = vector.shape_cast %5 : vector<1x8xf32> to vector<1x1x8xf32>
    %7 = vector.shape_cast %3 : vector<16x8xf32> to vector<1x16x8xf32>
    %cst = arith.constant dense<0.000000e+00> : vector<8xf32>
    %8 = vector.multi_reduction <add>, %3, %cst [0] : vector<16x8xf32> to vector<8xf32>
    %9 = vector.shape_cast %8 : vector<8xf32> to vector<1x8xf32>
    %10 = vector.shape_cast %9 : vector<1x8xf32> to vector<1x1x8xf32>
    %cst_11 = arith.constant 0.000000e+00 : f32
    %11 = vector.broadcast %cst_11 : f32 to vector<1x1x8xf32>
    %12 = arith.cmpf ogt, %10, %11 : vector<1x1x8xf32>
    %13 = vector.broadcast %4 : vector<1x8xf32> to vector<16x8xf32>
    %14 = arith.mulf %3, %13 : vector<16x8xf32>
    %cst_12 = arith.constant dense<0.000000e+00> : vector<16xf32>
    %15 = vector.multi_reduction <add>, %14, %cst_12 [1] : vector<16x8xf32> to vector<16xf32>
    %16 = vector.shape_cast %15 : vector<16xf32> to vector<16x1xf32>
    %cst_13 = arith.constant 6.000000e+01 : f32
    %17 = vector.broadcast %cst_13 : f32 to vector<16x1xf32>
    %18 = arith.cmpf ogt, %16, %17 : vector<16x1xf32>
    %cst_14 = arith.constant 1.000000e+02 : f32
    %19 = vector.broadcast %cst_14 : f32 to vector<16x1xf32>
    %20 = arith.cmpf ole, %16, %19 : vector<16x1xf32>
    %21 = arith.andi %18, %20 : vector<16x1xi1>
    %22 = arith.extui %21 : vector<16x1xi1> to vector<16x1xi32>
    %23 = arith.sitofp %22 : vector<16x1xi32> to vector<16x1xf32>
    %cst_15 = arith.constant 0.000000e+00 : f32
    %24 = vector.broadcast %cst_15 : f32 to vector<16x1xf32>
    %25 = arith.cmpf ogt, %16, %24 : vector<16x1xf32>
    %cst_16 = arith.constant 6.000000e+01 : f32
    %26 = vector.broadcast %cst_16 : f32 to vector<16x1xf32>
    %27 = arith.cmpf ole, %16, %26 : vector<16x1xf32>
    %28 = arith.andi %25, %27 : vector<16x1xi1>
    %29 = arith.extui %28 : vector<16x1xi1> to vector<16x1xi32>
    %30 = arith.sitofp %29 : vector<16x1xi32> to vector<16x1xf32>
    %31 = tpu.concatenate %23, %30 in 1 : vector<16x1xf32>, vector<16x1xf32> -> vector<16x2xf32>
    %cst_17 = arith.constant dense<0.000000e+00> : vector<2xf32>
    %32 = vector.multi_reduction <add>, %31, %cst_17 [0] : vector<16x2xf32> to vector<2xf32>
    %33 = vector.shape_cast %32 : vector<2xf32> to vector<1x2xf32>
    %34 = vector.shape_cast %33 : vector<1x2xf32> to vector<1x1x2xf32>
    %cst_18 = arith.constant dense<0.000000e+00> : vector<16xf32>
    %35 = vector.multi_reduction <add>, %31, %cst_18 [1] : vector<16x2xf32> to vector<16xf32>
    %36 = vector.shape_cast %35 : vector<16xf32> to vector<16x1xf32>
    %37 = vector.shape_cast %36 : vector<16x1xf32> to vector<1x16x1xf32>
    %38 = vector.shape_cast %31 : vector<16x2xf32> to vector<1x16x2xf32>
    %cst_19 = arith.constant 1.000000e+00 : f32
    %39 = vector.broadcast %cst_19 : f32 to vector<3x16x64xf32>
    %40 = arith.mulf %0, %39 : vector<3x16x64xf32>
    %cst_20 = arith.constant dense<0xFF800000> : vector<3x16xf32>
    %41 = vector.multi_reduction <maximumf>, %40, %cst_20 [2] : vector<3x16x64xf32> to vector<3x16xf32>
    %42 = vector.shape_cast %41 : vector<3x16xf32> to vector<3x16x1xf32>
    %43 = vector.broadcast %42 : vector<3x16x1xf32> to vector<3x16x64xf32>
    %44 = arith.subf %40, %43 : vector<3x16x64xf32>
    %45 = math.exp %44 : vector<3x16x64xf32>
    %cst_21 = arith.constant dense<0.000000e+00> : vector<3x16xf32>
    %46 = vector.multi_reduction <add>, %45, %cst_21 [2] : vector<3x16x64xf32> to vector<3x16xf32>
    %47 = vector.shape_cast %46 : vector<3x16xf32> to vector<3x16x1xf32>
    %48 = math.log %47 : vector<3x16x1xf32>
    %49 = arith.addf %42, %48 : vector<3x16x1xf32>
    %cst_22 = arith.constant -1.000000e+00 : f32
    %50 = vector.broadcast %cst_22 : f32 to vector<3x16x1xf32>
    %51 = arith.mulf %50, %49 : vector<3x16x1xf32>
    %52 = vector.broadcast %7 : vector<1x16x8xf32> to vector<3x16x8xf32>
    %53 = vector.broadcast %51 : vector<3x16x1xf32> to vector<3x16x8xf32>
    %54 = arith.mulf %52, %53 : vector<3x16x8xf32>
    %cst_23 = arith.constant dense<0.000000e+00> : vector<3x8xf32>
    %55 = vector.multi_reduction <add>, %54, %cst_23 [1] : vector<3x16x8xf32> to vector<3x8xf32>
    %56 = vector.shape_cast %55 : vector<3x8xf32> to vector<3x1x8xf32>
    %cst_24 = arith.constant 1.000000e+00 : f32
    %57 = vector.broadcast %cst_24 : f32 to vector<1x1x8xf32>
    %58 = arith.maximumf %10, %57 : vector<1x1x8xf32>
    %59 = vector.broadcast %58 : vector<1x1x8xf32> to vector<3x1x8xf32>
    %60 = arith.divf %56, %59 : vector<3x1x8xf32>
    %cst_25 = arith.constant 0xFF800000 : f32
    %61 = vector.shape_cast %12 : vector<1x1x8xi1> to vector<1x1x8xi1>
    %62 = vector.broadcast %61 : vector<1x1x8xi1> to vector<3x1x8xi1>
    %63 = vector.broadcast %cst_25 : f32 to vector<3x1x8xf32>
    %64 = arith.select %62, %60, %63 : vector<3x1x8xi1>, vector<3x1x8xf32>
    %cst_26 = arith.constant dense<0xFF800000> : vector<3x1xf32>
    %65 = vector.multi_reduction <maximumf>, %64, %cst_26 [2] : vector<3x1x8xf32> to vector<3x1xf32>
    %66 = vector.shape_cast %65 : vector<3x1xf32> to vector<3x1x1xf32>
    %cst_27 = arith.constant 0.000000e+00 : f32
    %67 = vector.shape_cast %12 : vector<1x1x8xi1> to vector<1x1x8xi1>
    %68 = vector.broadcast %67 : vector<1x1x8xi1> to vector<3x1x8xi1>
    %69 = vector.broadcast %cst_27 : f32 to vector<3x1x8xf32>
    %70 = arith.select %68, %60, %69 : vector<3x1x8xi1>, vector<3x1x8xf32>
    %cst_28 = arith.constant 0.000000e+00 : f32
    %71 = vector.broadcast %cst_28 : f32 to vector<3x1x8xf32>
    %72 = arith.cmpf oeq, %70, %71 : vector<3x1x8xf32>
    %73 = vector.shape_cast %66 : vector<3x1x1xf32> to vector<3x1x1xf32>
    %74 = vector.broadcast %73 : vector<3x1x1xf32> to vector<3x1x8xf32>
    %75 = arith.select %72, %74, %70 : vector<3x1x8xi1>, vector<3x1x8xf32>
    %cst_29 = arith.constant dense<0xFF800000> : vector<3x1xf32>
    %76 = vector.multi_reduction <maximumf>, %75, %cst_29 [2] : vector<3x1x8xf32> to vector<3x1xf32>
    %77 = vector.shape_cast %76 : vector<3x1xf32> to vector<3x1x1xf32>
    %78 = vector.broadcast %77 : vector<3x1x1xf32> to vector<3x1x8xf32>
    %79 = arith.subf %75, %78 : vector<3x1x8xf32>
    %80 = math.exp %79 : vector<3x1x8xf32>
    %cst_30 = arith.constant dense<0.000000e+00> : vector<3x1xf32>
    %81 = vector.multi_reduction <add>, %80, %cst_30 [2] : vector<3x1x8xf32> to vector<3x1xf32>
    %82 = vector.shape_cast %81 : vector<3x1xf32> to vector<3x1x1xf32>
    %83 = vector.broadcast %82 : vector<3x1x1xf32> to vector<3x1x8xf32>
    %84 = arith.divf %80, %83 : vector<3x1x8xf32>
    %cst_31 = arith.constant 1.000000e+00 : f32
    %85 = vector.broadcast %cst_31 : f32 to vector<3x1x8xf32>
    %86 = arith.addf %85, %84 : vector<3x1x8xf32>
    %87 = vector.broadcast %2 : vector<3x16x1xf32> to vector<3x16x2xf32>
    %88 = vector.broadcast %38 : vector<1x16x2xf32> to vector<3x16x2xf32>
    %89 = arith.mulf %87, %88 : vector<3x16x2xf32>
    %cst_32 = arith.constant dense<0.000000e+00> : vector<3x2xf32>
    %90 = vector.multi_reduction <add>, %89, %cst_32 [1] : vector<3x16x2xf32> to vector<3x2xf32>
    %91 = vector.shape_cast %90 : vector<3x2xf32> to vector<3x1x2xf32>
    %cst_33 = arith.constant 1.000000e+00 : f32
    %92 = vector.broadcast %cst_33 : f32 to vector<1x1x2xf32>
    %93 = arith.maximumf %34, %92 : vector<1x1x2xf32>
    %94 = vector.broadcast %93 : vector<1x1x2xf32> to vector<3x1x2xf32>
    %95 = arith.divf %91, %94 : vector<3x1x2xf32>
    %96 = vector.broadcast %38 : vector<1x16x2xf32> to vector<3x16x2xf32>
    %97 = vector.broadcast %95 : vector<3x1x2xf32> to vector<3x16x2xf32>
    %98 = arith.mulf %96, %97 : vector<3x16x2xf32>
    %cst_34 = arith.constant dense<0.000000e+00> : vector<3x16xf32>
    %99 = vector.multi_reduction <add>, %98, %cst_34 [2] : vector<3x16x2xf32> to vector<3x16xf32>
    %100 = vector.shape_cast %99 : vector<3x16xf32> to vector<3x16x1xf32>
    %cst_35 = arith.constant 0.000000e+00 : f32
    %101 = vector.broadcast %cst_35 : f32 to vector<1x16x1xf32>
    %102 = arith.cmpf ogt, %37, %101 : vector<1x16x1xf32>
    %103 = arith.subf %2, %100 : vector<3x16x1xf32>
    %cst_36 = arith.constant 0.000000e+00 : f32
    %104 = vector.shape_cast %102 : vector<1x16x1xi1> to vector<1x16x1xi1>
    %105 = vector.broadcast %104 : vector<1x16x1xi1> to vector<3x16x1xi1>
    %106 = vector.broadcast %cst_36 : f32 to vector<3x16x1xf32>
    %107 = arith.select %105, %103, %106 : vector<3x16x1xi1>, vector<3x16x1xf32>
    %cst_37 = arith.constant 0.000000e+00 : f32
    %108 = vector.broadcast %cst_37 : f32 to vector<3x16x1xf32>
    %109 = arith.cmpf olt, %107, %108 : vector<3x16x1xf32>
    %cst_38 = arith.constant 1.000000e+00 : f32
    %110 = vector.broadcast %cst_38 : f32 to vector<3x16x1xf32>
    %111 = arith.addf %110, %107 : vector<3x16x1xf32>
    %cst_39 = arith.constant 1.000000e+00 : f32
    %112 = vector.broadcast %cst_39 : f32 to vector<3x16x1xf32>
    %113 = arith.select %109, %112, %111 : vector<3x16x1xi1>, vector<3x16x1xf32>
    %114 = vector.broadcast %6 : vector<1x1x8xf32> to vector<3x1x8xf32>
    %115 = arith.mulf %86, %114 : vector<3x1x8xf32>
    %116 = math.exp %115 : vector<3x1x8xf32>
    %cst_40 = arith.constant 9.99999971E-10 : f32
    %117 = vector.broadcast %cst_40 : f32 to vector<3x1x8xf32>
    %118 = arith.addf %116, %117 : vector<3x1x8xf32>
    %119 = math.log %118 : vector<3x1x8xf32>
    %120 = vector.broadcast %119 : vector<3x1x8xf32> to vector<3x16x8xf32>
    %121 = arith.addf %1, %120 : vector<3x16x8xf32>
    %cst_41 = arith.constant dense<0xFF800000> : vector<3x16xf32>
    %122 = vector.multi_reduction <maximumf>, %121, %cst_41 [2] : vector<3x16x8xf32> to vector<3x16xf32>
    %123 = vector.shape_cast %122 : vector<3x16xf32> to vector<3x16x1xf32>
    %124 = vector.broadcast %123 : vector<3x16x1xf32> to vector<3x16x8xf32>
    %125 = arith.subf %121, %124 : vector<3x16x8xf32>
    %126 = math.exp %125 : vector<3x16x8xf32>
    %cst_42 = arith.constant dense<0.000000e+00> : vector<3x16xf32>
    %127 = vector.multi_reduction <add>, %126, %cst_42 [2] : vector<3x16x8xf32> to vector<3x16xf32>
    %128 = vector.shape_cast %127 : vector<3x16xf32> to vector<3x16x1xf32>
    %129 = math.log %128 : vector<3x16x1xf32>
    %130 = arith.addf %123, %129 : vector<3x16x1xf32>
    %131 = vector.broadcast %130 : vector<3x16x1xf32> to vector<3x16x8xf32>
    %132 = arith.subf %121, %131 : vector<3x16x8xf32>
    %133 = vector.broadcast %7 : vector<1x16x8xf32> to vector<3x16x8xf32>
    %134 = arith.mulf %132, %133 : vector<3x16x8xf32>
    %cst_43 = arith.constant dense<0.000000e+00> : vector<3x16xf32>
    %135 = vector.multi_reduction <add>, %134, %cst_43 [2] : vector<3x16x8xf32> to vector<3x16xf32>
    %136 = vector.shape_cast %135 : vector<3x16xf32> to vector<3x16x1xf32>
    %137 = arith.mulf %136, %113 : vector<3x16x1xf32>
    %cst_44 = arith.constant dense<0.000000e+00> : vector<3x1xf32>
    %138 = vector.multi_reduction <add>, %137, %cst_44 [1] : vector<3x16x1xf32> to vector<3x1xf32>
    %139 = vector.shape_cast %138 : vector<3x1xf32> to vector<3x1x1xf32>
    %cst_45 = arith.constant dense<0.000000e+00> : vector<1x1xf32>
    %140 = vector.multi_reduction <add>, %139, %cst_45 [0] : vector<3x1x1xf32> to vector<1x1xf32>
    %141 = vector.shape_cast %140 : vector<1x1xf32> to vector<1x1x1xf32>
    %142 = vector.shape_cast %141 : vector<1x1x1xf32> to vector<1x1xf32>
    %cst_46 = arith.constant -6.250000e-02 : f32
    %143 = vector.broadcast %cst_46 : f32 to vector<1x1xf32>
    %144 = arith.mulf %143, %142 : vector<1x1xf32>
    %145 = vector.extract_strided_slice %86 {offsets = [0, 0, 0], sizes = [1, 1, 8], strides = [1, 1, 1]} : vector<3x1x8xf32> to vector<1x1x8xf32>
    %146 = vector.shape_cast %145 : vector<1x1x8xf32> to vector<1x8xf32>
    %c0_47 = arith.constant 0 : index
    %c0_48 = arith.constant 0 : index
    %147 = vector.load %arg3[%c0_47, %c0_48] : memref<4x8xf32, #tpu.memory_space<vmem>>, vector<1x8xf32>
    tpu.vector_store %arg3[%c0_47, %c0_48], %146 {strides = array<i32>} : memref<4x8xf32, #tpu.memory_space<vmem>>, vector<1x8xf32>,
    %148 = vector.extract_strided_slice %86 {offsets = [1, 0, 0], sizes = [1, 1, 8], strides = [1, 1, 1]} : vector<3x1x8xf32> to vector<1x1x8xf32>
    %149 = vector.shape_cast %148 : vector<1x1x8xf32> to vector<1x8xf32>
    %c1 = arith.constant 1 : index
    %c0_49 = arith.constant 0 : index
    %150 = vector.load %arg3[%c1, %c0_49] : memref<4x8xf32, #tpu.memory_space<vmem>>, vector<1x8xf32>
    tpu.vector_store %arg3[%c1, %c0_49], %149 {strides = array<i32>} : memref<4x8xf32, #tpu.memory_space<vmem>>, vector<1x8xf32>,
    %151 = vector.extract_strided_slice %86 {offsets = [2, 0, 0], sizes = [1, 1, 8], strides = [1, 1, 1]} : vector<3x1x8xf32> to vector<1x1x8xf32>
    %152 = vector.shape_cast %151 : vector<1x1x8xf32> to vector<1x8xf32>
    %c2 = arith.constant 2 : index
    %c0_50 = arith.constant 0 : index
    %153 = vector.load %arg3[%c2, %c0_50] : memref<4x8xf32, #tpu.memory_space<vmem>>, vector<1x8xf32>
    tpu.vector_store %arg3[%c2, %c0_50], %152 {strides = array<i32>} : memref<4x8xf32, #tpu.memory_space<vmem>>, vector<1x8xf32>,
    %154 = vector.shape_cast %144 : vector<1x1xf32> to vector<1x1xf32>
    %155 = vector.broadcast %154 : vector<1x1xf32> to vector<1x8xf32>
    %c3 = arith.constant 3 : index
    %c0_51 = arith.constant 0 : index
    %156 = vector.load %arg3[%c3, %c0_51] : memref<4x8xf32, #tpu.memory_space<vmem>>, vector<1x8xf32>
    tpu.vector_store %arg3[%c3, %c0_51], %155 {strides = array<i32>} : memref<4x8xf32, #tpu.memory_space<vmem>>, vector<1x8xf32>,
    return
  }
}

</mosaic_0001>

<bundles_post_ra>
// kernel: a3la_loss_pallas.1
= control target key start
LH: loop header
LB: loop body
LE: loop exit
PB: predicated region body
PF: predicated region fallthrough
CT: control target
= control target key end

     0   :  { %vm90_vm0 = vcmask 523264   ;;  %vm30_vm1 = vcmask 64512   ;;  %vm572_vm6 = vcmask 57344   ;;  %vm73_vm7 = vcmask 7168   ;;  %s1007_s0 = inlined_call_operand.vmem [shape: f32[3,16,64], index: 0, kind: input, shape index: {}]   ;;  %s1008_s2 = inlined_call_operand.vmem [shape: f32[18,8], index: 2, kind: input, shape index: {}]   ;;  %s1009_s3 = inlined_call_operand.vmem [shape: f32[4,8], index: 3, kind: output, shape index: {}]   ;;  %s1010_s1 = inlined_call_operand.vmem [shape: f32[3,16,9], index: 1, kind: input, shape index: {}]  }
   0x1   :  { %v14_v0 = vld [vmem:[%s1007_s0] sm:$0xff]  ;;  %v16_v1 = vld [vmem:[%s1007_s0 + $0x10] sm:$0xff]  ;;  %v15_v2 = vld [vmem:[%s1007_s0 + $0x8] sm:$0xff]  ;;  %vm76_vm8 = vcmask 15360  }
   0x2   :  { %v91_v3 = vsel %vm90_vm0, %v14_v0, -inf  ;;  %v97_v4 = vsel %vm90_vm0, %v16_v1, -inf  ;;  %v17_v5 = vld [vmem:[%s1007_s0 + $0x18] sm:$0xff]  ;;  %v94_v6 = vsel %vm90_vm0, %v15_v2, -inf  ;;  %v18_v8 = vld [vmem:[%s1007_s0 + $0x20] sm:$0xff]  ;;  %v19_v9 = vld [vmem:[%s1007_s0 + $0x28] sm:$0xff] }
   0x3   :  { %92 = vmax.xlane.f32.xlu0 %v91_v3  ;;  %98 = vmax.xlane.f32.xlu1 %v97_v4  ;;  %v100_v7 = vsel %vm90_vm0, %v17_v5, -inf  ;;  %v103_v10 = vsel %vm90_vm0, %v18_v8, -inf  ;;  %v106_v11 = vsel %vm90_vm0, %v19_v9, -inf  ;;  %v744_v42 = vld [vmem:[%s1008_s2] sm:$0xff]  ;;  %v749_v43 = vld [vmem:[%s1008_s2 + $0x8] sm:$0xff] }
   0x4   :  { %v31_v44 = vsel %vm30_vm1, %v744_v42, 0.0  ;;  %v32_v45 = vsel %vm30_vm1, %v749_v43, 0.0 }
   0x5   :  { %v33_v46 = vadd.f32 %v32_v45, %v31_v44 }
   0x7   :  { %95 = vmax.xlane.f32.xlu0 %v94_v6  ;;  %101 = vmax.xlane.f32.xlu1 %v100_v7  ;;  %v34_v47 = vrot.slane %v33_v46, 4 }
   0x9   :  { %v35_v49 = vadd.f32 %v34_v47, %v33_v46 }
   0xb   :  { %104 = vmax.xlane.f32.xlu0 %v103_v10  ;;  %107 = vmax.xlane.f32.xlu1 %v106_v11  ;;  %v36_v52 = vrot.slane %v35_v49, 2 }
   0xd   :  { %v37_v55 = vadd.f32 %v36_v52, %v35_v49 }
   0xf   :  { %v38_v60 = vrot.slane %v37_v55, 1 }
  0x11   :  { %v757_v3 = vadd.f32 %v38_v60, %v37_v55 }
  0x13   :  { %vm40_vm2 = vcmp.gt.f32.partialorder %v757_v3, 0.0 }
  0x90   :  { %v717_v12 = vpop.xlane.xlu0 %92  ;;  %v719_v13 = vpop.xlane.xlu1 %98 }
  0x91   :  { %v109_v14 = vsub.f32 %v14_v0, %v717_v12  ;;  %v111_v15 = vsub.f32 %v16_v1, %v719_v13 }
  0x93   :  { %v115_v16 = vmul.f32 1.442695, %v109_v14  ;;  %v119_v17 = vmul.f32 1.442695, %v111_v15  ;;  %v202_v15 = vmax.f32 %v757_v3, 1.0 }
  0x94   :  { %v723_v18 = vpop.xlane.xlu0 %95  ;;  %v725_v19 = vpop.xlane.xlu1 %101 }
  0x95   :  { %595 = vpow2.f32 %v115_v16  ;;  %v110_v20 = vsub.f32 %v15_v2, %v723_v18  ;;  %v112_v21 = vsub.f32 %v17_v5, %v725_v19 }
  0x96   :  { %597 = vpow2.f32 %v119_v17 }
  0x97   :  { %v117_v22 = vmul.f32 1.442695, %v110_v20  ;;  %v121_v23 = vmul.f32 1.442695, %v112_v21 }
  0x98   :  { %v729_v24 = vpop.xlane.xlu0 %104  ;;  %v731_v25 = vpop.xlane.xlu1 %107 }
  0x99   :  { %599 = vpow2.f32 %v117_v22  ;;  %v113_v26 = vsub.f32 %v18_v8, %v729_v24  ;;  %v114_v27 = vsub.f32 %v19_v9, %v731_v25 }
  0x9a   :  { %601 = vpow2.f32 %v121_v23 }
  0x9b   :  { %v123_v28 = vmul.f32 1.442695, %v113_v26  ;;  %v125_v29 = vmul.f32 1.442695, %v114_v27 }
  0x9d   :  { %603 = vpow2.f32 %v123_v28 }
  0x9e   :  { %605 = vpow2.f32 %v125_v29 }
  0x9f   :  { %v596_v30 = vpop.eup %595 }
  0xa0   :  { %v598_v31 = vpop.eup %597  ;;  %v127_v32 = vsel %vm90_vm0, %v596_v30, 0.0 }
  0xa1   :  { %128 = vadd.xlane.f32.xlu0 %v127_v32  ;;  %v133_v33 = vsel %vm90_vm0, %v598_v31, 0.0 }
  0xa3   :  { %v600_v34 = vpop.eup %599 }
  0xa4   :  { %v602_v35 = vpop.eup %601  ;;  %v130_v36 = vsel %vm90_vm0, %v600_v34, 0.0 }
  0xa5   :  { %134 = vadd.xlane.f32.xlu0 %v133_v33  ;;  %131 = vadd.xlane.f32.xlu1 %v130_v36  ;;  %v136_v37 = vsel %vm90_vm0, %v602_v35, 0.0 }
  0xa7   :  { %v604_v38 = vpop.eup %603 }
  0xa8   :  { %v606_v39 = vpop.eup %605  ;;  %v139_v40 = vsel %vm90_vm0, %v604_v38, 0.0 }
  0xa9   :  { %137 = vadd.xlane.f32.xlu1 %v136_v37  ;;  %140 = vadd.xlane.f32.xlu0 %v139_v40  ;;  %v142_v41 = vsel %vm90_vm0, %v606_v39, 0.0 }
  0xad   :  { %143 = vadd.xlane.f32.xlu1 %v142_v41 }
 0x12e   :  { %v129_v48 = vpop.xlane.xlu0 %128 }
 0x12f   :  { %607 = vlog2.f32 %v129_v48 }
 0x132   :  { %v132_v50 = vpop.xlane.xlu1 %131  ;;  %v135_v51 = vpop.xlane.xlu0 %134 }
 0x133   :  { %609 = vlog2.f32 %v132_v50 }
 0x134   :  { %611 = vlog2.f32 %v135_v51 }
 0x136   :  { %v138_v53 = vpop.xlane.xlu1 %137  ;;  %v141_v54 = vpop.xlane.xlu0 %140 }
 0x137   :  { %613 = vlog2.f32 %v138_v53 }
 0x138   :  { %615 = vlog2.f32 %v141_v54 }
 0x139   :  { %v608_v56 = vpop.eup %607 }
 0x13a   :  { %v146_v57 = vmul.f32 0.6931472, %v608_v56  ;;  %v144_v58 = vpop.xlane.xlu1 %143 }
 0x13b   :  { %617 = vlog2.f32 %v144_v58 }
 0x13c   :  { %v157_v59 = vadd.f32 %v146_v57, %v717_v12  ;;  %619 = vrcp.f32 %v202_v15 }
 0x13d   :  { %v610_v61 = vpop.eup %609 }
 0x13e   :  { %v612_v62 = vpop.eup %611  ;;  %v163_v63 = vmul.f32 -1.0, %v157_v59  ;;  %v148_v0 = vmul.f32 0.6931472, %v610_v61 }
 0x13f   :  { %v150_v1 = vmul.f32 0.6931472, %v612_v62 }
 0x140   :  { %v158_v2 = vadd.f32 %v148_v0, %v723_v18  ;;  %v169_v5 = vmul.f32 %v163_v63, %v744_v42 }
 0x141   :  { %v614_v4 = vpop.eup %613  ;;  %v159_v6 = vadd.f32 %v150_v1, %v719_v13 }
 0x142   :  { %v616_v7 = vpop.eup %615  ;;  %v164_v8 = vmul.f32 -1.0, %v158_v2  ;;  %v152_v9 = vmul.f32 0.6931472, %v614_v4  ;;  %v175_v17 = vsel %vm30_vm1, %v169_v5, 0.0 }
 0x143   :  { %v165_v10 = vmul.f32 -1.0, %v159_v6  ;;  %v154_v11 = vmul.f32 0.6931472, %v616_v7 }
 0x144   :  { %v170_v12 = vmul.f32 %v164_v8, %v749_v43  ;;  %v160_v14 = vadd.f32 %v152_v9, %v725_v19 }
 0x145   :  { %v618_v16 = vpop.eup %617  ;;  %v161_v18 = vadd.f32 %v154_v11, %v729_v24  ;;  %v171_v13 = vmul.f32 %v165_v10, %v744_v42 }
 0x146   :  { %v176_v20 = vsel %vm30_vm1, %v170_v12, 0.0  ;;  %v166_v21 = vmul.f32 -1.0, %v160_v14  ;;  %v156_v22 = vmul.f32 0.6931472, %v618_v16  ;;  %v620_v46 = vpop.eup %619 }
 0x147   :  { %v177_v23 = vadd.f32 %v176_v20, %v175_v17  ;;  %v167_v26 = vmul.f32 -1.0, %v161_v18  ;;  %v184_v29 = vsel %vm30_vm1, %v171_v13, 0.0 }
 0x148   :  { %v172_v27 = vmul.f32 %v166_v21, %v749_v43  ;;  %v162_v28 = vadd.f32 %v156_v22, %v731_v25 }
 0x149   :  { %v178_v19 = vrot.slane %v177_v23, 4  ;;  %v173_v24 = vmul.f32 %v167_v26, %v744_v42 }
 0x14a   :  { %v185_v30 = vsel %vm30_vm1, %v172_v27, 0.0  ;;  %v168_v31 = vmul.f32 -1.0, %v162_v28 }
 0x14b   :  { %v186_v32 = vadd.f32 %v185_v30, %v184_v29  ;;  %v179_v33 = vadd.f32 %v178_v19, %v177_v23  ;;  %v193_v37 = vsel %vm30_vm1, %v173_v24, 0.0  ;;  %v671_v30 = vmov 8  }
 0x14c   :  { %v174_v34 = vmul.f32 %v168_v31, %v749_v43  ;;  %594 = vset.pattern.permute.xlu0 %v671_v30  ;;  %593 = vset.pattern.permute.xlu1 %v671_v30 }
 0x14d   :  { %v180_v35 = vrot.slane %v179_v33, 2  ;;  %v187_v36 = vrot.slane %v186_v32, 4 }
 0x14e   :  { %v194_v38 = vsel %vm30_vm1, %v174_v34, 0.0 }
 0x14f   :  { %v195_v25 = vadd.f32 %v194_v38, %v193_v37  ;;  %v181_v39 = vadd.f32 %v180_v35, %v179_v33  ;;  %v188_v40 = vadd.f32 %v187_v36, %v186_v32  ;;  %v29_v35 = vld [vmem:[%s1008_s2 + $0x11] sm:$0x1] }
 0x151   :  { %v182_v41 = vrot.slane %v181_v39, 1  ;;  %v189_v44 = vrot.slane %v188_v40, 2  ;;  %v196_v45 = vrot.slane %v195_v25, 4 }
 0x153   :  { %v183_v47 = vadd.f32 %v182_v41, %v181_v39  ;;  %v190_v48 = vadd.f32 %v189_v44, %v188_v40  ;;  %v197_v49 = vadd.f32 %v196_v45, %v195_v25 }
 0x155   :  { %v204_v50 = vmul.f32 %v620_v46, %v183_v47  ;;  %v191_v51 = vrot.slane %v190_v48, 1  ;;  %v198_v52 = vrot.slane %v197_v49, 2 }
 0x157   :  { %v209_v53 = vsel %vm40_vm2, %v204_v50, -inf  ;;  %v192_v54 = vadd.f32 %v191_v51, %v190_v48  ;;  %v199_v55 = vadd.f32 %v198_v52, %v197_v49  ;;  %v221_v56 = vsel %vm40_vm2, %v204_v50, 0.0 }
 0x158   :  { %v212_v57 = vsel %vm30_vm1, %v209_v53, -inf  ;;  %vm224_vm3 = vcmp.eq.f32.partialorder %v221_v56, 0.0  ;;  %v412_v53 = vlaneseq }
 0x159   :  { %213 = vmax.xlane.f32.xlu0 %v212_v57  ;;  %v205_v58 = vmul.f32 %v620_v46, %v192_v54  ;;  %v200_v59 = vrot.slane %v199_v55, 1 }
 0x15b   :  { %v210_v60 = vsel %vm40_vm2, %v205_v58, -inf  ;;  %v201_v61 = vadd.f32 %v200_v59, %v199_v55  ;;  %v222_v62 = vsel %vm40_vm2, %v205_v58, 0.0 }
 0x15c   :  { %v215_v63 = vsel %vm30_vm1, %v210_v60, -inf  ;;  %vm225_vm4 = vcmp.eq.f32.partialorder %v222_v62, 0.0 }
 0x15d   :  { %216 = vmax.xlane.f32.xlu1 %v215_v63  ;;  %v206_v0 = vmul.f32 %v620_v46, %v201_v61  ;;  %v816_v61 = vld [vmem:[%s1010_s1 + $0x8] sm:$0xff] }
 0x15f   :  { %v211_v1 = vsel %vm40_vm2, %v206_v0, -inf  ;;  %v223_v2 = vsel %vm40_vm2, %v206_v0, 0.0 }
 0x160   :  { %v218_v4 = vsel %vm30_vm1, %v211_v1, -inf  ;;  %vm226_vm5 = vcmp.eq.f32.partialorder %v223_v2, 0.0 }
 0x161   :  { %219 = vmax.xlane.f32.xlu0 %v218_v4 }
 0x1e6   :  { %v214_v5 = vpop.xlane.xlu0 %213 }
 0x1e7   :  { %v227_v6 = vsel %vm224_vm3, %v214_v5, %v221_v56  ;;  %v413_v56 = vshrl.u32 %v412_v53, 7  ;;  %v832_v5 = vld [vmem:[%s1010_s1 + $0x18] sm:$0xff] }
 0x1e8   :  { %v230_v7 = vsel %vm30_vm1, %v227_v6, -inf }
 0x1e9   :  { %231 = vmax.xlane.f32.xlu1 %v230_v7  ;;  %v414_v58 = vsub.s32 0, %v413_v56 }
 0x1ea   :  { %v217_v8 = vpop.xlane.xlu1 %216 }
 0x1eb   :  { %v228_v9 = vsel %vm225_vm4, %v217_v8, %v222_v62  ;;  %v821_v62 = vld [vmem:[%s1010_s1] sm:$0xff] }
 0x1ec   :  { %v233_v10 = vsel %vm30_vm1, %v228_v9, -inf }
 0x1ed   :  { %234 = vmax.xlane.f32.xlu0 %v233_v10 }
 0x1ee   :  { %v220_v11 = vpop.xlane.xlu0 %219 }
 0x1ef   :  { %v229_v12 = vsel %vm226_vm5, %v220_v11, %v223_v2 }
 0x1f0   :  { %v236_v3 = vsel %vm30_vm1, %v229_v12, -inf }
 0x1f1   :  { %237 = vmax.xlane.f32.xlu1 %v236_v3 }
 0x276   :  { %v232_v14 = vpop.xlane.xlu1 %231 }
 0x277   :  { %v239_v15 = vsub.f32 %v227_v6, %v232_v14  ;;  %v837_v6 = vld [vmem:[%s1010_s1 + $0x10] sm:$0xff]  ;;  %v852_v14 = vld [vmem:[%s1010_s1 + $0x28] sm:$0xff] }
 0x279   :  { %v242_v16 = vmul.f32 1.442695, %v239_v15  ;;  %v857_v15 = vld [vmem:[%s1010_s1 + $0x20] sm:$0xff] }
 0x27a   :  { %v235_v17 = vpop.xlane.xlu0 %234 }
 0x27b   :  { %621 = vpow2.f32 %v242_v16  ;;  %v240_v18 = vsub.f32 %v228_v9, %v235_v17  ;;  %v586_v16 = vld [vmem:[%s1008_s2 + $0x10] ss:$0 sm:$0xff] }
 0x27d   :  { %v244_v20 = vmul.f32 1.442695, %v240_v18 }
 0x27e   :  { %v238_v13 = vpop.xlane.xlu1 %237 }
 0x27f   :  { %623 = vpow2.f32 %v244_v20  ;;  %v241_v21 = vsub.f32 %v229_v12, %v238_v13 }
 0x281   :  { %v246_v22 = vmul.f32 1.442695, %v241_v21 }
 0x283   :  { %625 = vpow2.f32 %v246_v22  ;;  %v46_v22 = vmul.f32 %v586_v16, %v749_v43 }
 0x285   :  { %v622_v23 = vpop.eup %621 }
 0x286   :  { %v248_v26 = vsel %vm30_vm1, %v622_v23, 0.0 }
 0x287   :  { %249 = vadd.xlane.f32.xlu0 %v248_v26 }
 0x289   :  { %v624_v27 = vpop.eup %623 }
 0x28a   :  { %v251_v28 = vsel %vm30_vm1, %v624_v27, 0.0 }
 0x28b   :  { %252 = vadd.xlane.f32.xlu1 %v251_v28  ;;  %v50_v28 = vsel %vm30_vm1, %v46_v22, 0.0 }
 0x28d   :  { %v626_v19 = vpop.eup %625 }
 0x28e   :  { %v254_v29 = vsel %vm30_vm1, %v626_v19, 0.0 }
 0x28f   :  { %255 = vadd.xlane.f32.xlu0 %v254_v29 }
 0x314   :  { %v250_v24 = vpop.xlane.xlu0 %249 }
 0x315   :  { %627 = vrcp.f32 %v250_v24 }
 0x318   :  { %v253_v31 = vpop.xlane.xlu1 %252 }
 0x319   :  { %629 = vrcp.f32 %v253_v31 }
 0x31c   :  { %v256_v32 = vpop.xlane.xlu0 %255 }
 0x31d   :  { %631 = vrcp.f32 %v256_v32 }
 0x31f   :  { %v628_v33 = vpop.eup %627 }
 0x320   :  { %v258_v34 = vmul.f32 %v628_v33, %v622_v23  ;;  %v45_v23 = vmul.f32 %v586_v16, %v744_v42 }
 0x322   :  { %v263_v36 = vadd.f32 1.0, %v258_v34 }
 0x323   :  { %v630_v37 = vpop.eup %629 }
 0x324   :  { %v394_v38 = vmul.f32 %v263_v36, %v29_v35  ;;  %v260_v25 = vmul.f32 %v630_v37, %v624_v27  ;;  %573 = vst.msk [vmem:[%s1009_s3] sm:$0x1] %vm572_vm6, %v263_v36 }
 0x326   :  { %v397_v39 = vmul.f32 1.442695, %v394_v38  ;;  %v264_v40 = vadd.f32 1.0, %v260_v25 }
 0x327   :  { %v632_v41 = vpop.eup %631 }
 0x328   :  { %v395_v44 = vmul.f32 %v264_v40, %v29_v35  ;;  %v262_v45 = vmul.f32 %v632_v41, %v626_v19  ;;  %633 = vpow2.f32 %v397_v39  ;;  %574 = vst.msk [vmem:[%s1009_s3 + $0x1] sm:$0x1] %vm572_vm6, %v264_v40  ;;  %v47_v19 = vsel %vm30_vm1, %v45_v23, 0.0 }
 0x32a   :  { %v399_v46 = vmul.f32 1.442695, %v395_v44  ;;  %v265_v47 = vadd.f32 1.0, %v262_v45 }
 0x32c   :  { %v396_v48 = vmul.f32 %v265_v47, %v29_v35  ;;  %635 = vpow2.f32 %v399_v46  ;;  %575 = vst.msk [vmem:[%s1009_s3 + $0x2] sm:$0x1] %vm572_vm6, %v265_v47 }
 0x32e   :  { %v401_v49 = vmul.f32 1.442695, %v396_v48 }
 0x330   :  { %637 = vpow2.f32 %v401_v49 }
 0x332   :  { %v634_v50 = vpop.eup %633 }
 0x333   :  { %v403_v51 = vadd.f32 1e-09, %v634_v50  ;;  %v672_v50 = vmov 0.0  }
 0x335   :  { %639 = vlog2.f32 %v403_v51 }
 0x336   :  { %v636_v52 = vpop.eup %635 }
 0x337   :  { %v404_v54 = vadd.f32 1e-09, %v636_v52 }
 0x339   :  { %641 = vlog2.f32 %v404_v54 }
 0x33a   :  { %v638_v55 = vpop.eup %637 }
 0x33b   :  { %v405_v57 = vadd.f32 1e-09, %v638_v55 }
 0x33d   :  { %643 = vlog2.f32 %v405_v57 }
 0x33f   :  { %v640_v59 = vpop.eup %639 }
 0x340   :  { %v407_v60 = vmul.f32 0.6931472, %v640_v59 }
 0x342   :  { %v415_v63 = vrot.slane %v407_v60, %v414_v58 }
 0x343   :  { %v642_v0 = vpop.eup %641 }
 0x344   :  { %v824_v1 = vadd.f32 %v415_v63, %v816_v61  ;;  %v827_v2 = vadd.f32 %v415_v63, %v821_v62  ;;  %v409_v4 = vmul.f32 0.6931472, %v642_v0 }
 0x346   :  { %v433_v7 = vsel %vm30_vm1, %v824_v1, -inf  ;;  %v430_v8 = vsel %vm30_vm1, %v827_v2, -inf  ;;  %v419_v9 = vrot.slane %v409_v4, %v414_v58 }
 0x347   :  { %v644_v10 = vpop.eup %643  ;;  %434 = vmax.xlane.f32.xlu0 %v433_v7  ;;  %431 = vmax.xlane.f32.xlu1 %v430_v8 }
 0x348   :  { %v844_v11 = vadd.f32 %v419_v9, %v832_v5  ;;  %v847_v12 = vadd.f32 %v419_v9, %v837_v6  ;;  %v411_v3 = vmul.f32 0.6931472, %v644_v10 }
 0x34a   :  { %v439_v17 = vsel %vm30_vm1, %v844_v11, -inf  ;;  %v436_v18 = vsel %vm30_vm1, %v847_v12, -inf  ;;  %v423_v20 = vrot.slane %v411_v3, %v414_v58 }
 0x34b   :  { %440 = vmax.xlane.f32.xlu0 %v439_v17  ;;  %437 = vmax.xlane.f32.xlu1 %v436_v18 }
 0x34c   :  { %v867_v13 = vadd.f32 %v423_v20, %v852_v14  ;;  %v870_v21 = vadd.f32 %v423_v20, %v857_v15 }
 0x34e   :  { %v445_v26 = vsel %vm30_vm1, %v867_v13, -inf  ;;  %v442_v27 = vsel %vm30_vm1, %v870_v21, -inf }
 0x34f   :  { %446 = vmax.xlane.f32.xlu0 %v445_v26  ;;  %443 = vmax.xlane.f32.xlu1 %v442_v27 }
 0x353   :  { %51 = vadd.xlane.f32.xlu0 %v50_v28  ;;  %48 = vadd.xlane.f32.xlu1 %v47_v19 }
 0x364   :  { %268 = vperm.xlu1 %593, %v821_v62  }
 0x368   :  { %278 = vperm.xlu1 %593, %v837_v6  }
 0x369   :  { %273 = vperm.xlu0 %594, %v816_v61  }
 0x36c   :  { %283 = vperm.xlu1 %593, %v832_v5  }
 0x36d   :  { %293 = vperm.xlu0 %594, %v852_v14  }
 0x370   :  { %288 = vperm.xlu1 %593, %v857_v15  }
 0x3d4   :  { %v886_v29 = vpop.xlane.xlu1 %431  ;;  %v888_v30 = vpop.xlane.xlu0 %434 }
 0x3d5   :  { %v448_v24 = vsub.f32 %v827_v2, %v886_v29  ;;  %v449_v31 = vsub.f32 %v824_v1, %v888_v30 }
 0x3d7   :  { %v454_v32 = vmul.f32 1.442695, %v448_v24  ;;  %v456_v33 = vmul.f32 1.442695, %v449_v31 }
 0x3d8   :  { %v894_v34 = vpop.xlane.xlu1 %437  ;;  %v896_v35 = vpop.xlane.xlu0 %440 }
 0x3d9   :  { %645 = vpow2.f32 %v454_v32  ;;  %v450_v36 = vsub.f32 %v847_v12, %v894_v34  ;;  %v451_v37 = vsub.f32 %v844_v11, %v896_v35 }
 0x3da   :  { %647 = vpow2.f32 %v456_v33 }
 0x3db   :  { %v458_v38 = vmul.f32 1.442695, %v450_v36  ;;  %v460_v25 = vmul.f32 1.442695, %v451_v37 }
 0x3dc   :  { %v902_v39 = vpop.xlane.xlu1 %443  ;;  %v904_v40 = vpop.xlane.xlu0 %446 }
 0x3dd   :  { %649 = vpow2.f32 %v458_v38  ;;  %v452_v41 = vsub.f32 %v870_v21, %v902_v39  ;;  %v453_v44 = vsub.f32 %v867_v13, %v904_v40 }
 0x3de   :  { %651 = vpow2.f32 %v460_v25 }
 0x3df   :  { %v462_v45 = vmul.f32 1.442695, %v452_v41  ;;  %v464_v46 = vmul.f32 1.442695, %v453_v44 }
 0x3e0   :  { %v49_v47 = vpop.xlane.xlu1 %48  ;;  %v52_v48 = vpop.xlane.xlu0 %51 }
 0x3e1   :  { %vm53_vm9 = vcmp.gt.f32.partialorder %v49_v47, 60.0  ;;  %vm55_vm10 = vcmp.le.f32.partialorder %v49_v47, 100.0  ;;  %vm63_vm11 = vcmp.gt.f32.partialorder %v49_v47, 0.0  ;;  %653 = vpow2.f32 %v464_v46 }
 0x3e2   :  { %vm57_vm12 = vmand %vm53_vm9, %vm55_vm10  ;;  %vm65_vm13 = vcmp.le.f32.partialorder %v49_v47, 60.0  ;;  %vm54_vm14 = vcmp.gt.f32.partialorder %v52_v48, 60.0  ;;  %vm56_vm15 = vcmp.le.f32.partialorder %v52_v48, 100.0  ;;  %655 = vpow2.f32 %v462_v45 }
 0x3e3   :  { %v646_v49 = vpop.eup %645  ;;  %v587_v51 = vsel %vm57_vm12, 1.0, %v672_v50  ;;  %vm67_vm0 = vmand %vm63_vm11, %vm65_vm13  ;;  %vm64_vm2 = vcmp.gt.f32.partialorder %v52_v48, 0.0  ;;  %vm66_vm3 = vcmp.le.f32.partialorder %v52_v48, 60.0  ;;  %vm538_vm10 = vcmask 72768  }
 0x3e4   :  { %v648_v52 = vpop.eup %647  ;;  %v466_v53 = vsel %vm30_vm1, %v646_v49, 0.0  ;;  %v589_v54 = vsel %vm67_vm0, 1.0, %v672_v50  ;;  %vm58_vm4 = vmand %vm54_vm14, %vm56_vm15  ;;  %v269_v55 = vpop.permute.xlu1 %268 }
 0x3e5   :  { %467 = vadd.xlane.f32.xlu1 %v466_v53  ;;  %v469_v56 = vsel %vm30_vm1, %v648_v52, 0.0  ;;  %v913_v57 = vsel %vm73_vm7, %v587_v51, %v589_v54  ;;  %v588_v58 = vsel %vm58_vm4, 1.0, %v672_v50  ;;  %vm68_vm5 = vmand %vm64_vm2, %vm66_vm3 }
 0x3e6   :  { %470 = vadd.xlane.f32.xlu0 %v469_v56  ;;  %v917_v59 = vsel %vm76_vm8, %v913_v57, 0.0  ;;  %v590_v60 = vsel %vm68_vm5, 1.0, %v672_v50  ;;  %v296_v63 = vmul.f32 %v269_v55, %v913_v57 }
 0x3e7   :  { %v650_v0 = vpop.eup %649  ;;  %v921_v4 = vsel %vm73_vm7, %v588_v58, %v590_v60 }
 0x3e8   :  { %v472_v7 = vsel %vm30_vm1, %v650_v0, 0.0  ;;  %v926_v8 = vsel %vm76_vm8, %v921_v4, 0.0  ;;  %v274_v9 = vpop.permute.xlu0 %273  ;;  %v279_v10 = vpop.permute.xlu1 %278  ;;  %v302_v17 = vsel %vm76_vm8, %v296_v63, 0.0 }
 0x3e9   :  { %v652_v3 = vpop.eup %651  ;;  %473 = vadd.xlane.f32.xlu1 %v472_v7  ;;  %v79_v16 = vadd.f32 %v926_v8, %v917_v59  ;;  %v297_v18 = vmul.f32 %v274_v9, %v921_v4  ;;  %v298_v20 = vmul.f32 %v279_v10, %v913_v57 }
 0x3ea   :  { %v475_v27 = vsel %vm30_vm1, %v652_v3, 0.0 }
 0x3eb   :  { %v80_v22 = vrot.slane %v79_v16, 4  ;;  %v303_v23 = vsel %vm76_vm8, %v297_v18, 0.0  ;;  %v654_v26 = vpop.eup %653  ;;  %v311_v19 = vsel %vm76_vm8, %v298_v20, 0.0 }
 0x3ec   :  { %v304_v28 = vadd.f32 %v303_v23, %v302_v17  ;;  %v284_v24 = vpop.permute.xlu1 %283  ;;  %v294_v31 = vpop.permute.xlu0 %293  ;;  %v481_v33 = vsel %vm30_vm1, %v654_v26, 0.0 }
 0x3ed   :  { %v656_v32 = vpop.eup %655  ;;  %476 = vadd.xlane.f32.xlu1 %v475_v27  ;;  %v81_v36 = vadd.f32 %v80_v22, %v79_v16  ;;  %v299_v37 = vmul.f32 %v284_v24, %v921_v4  ;;  %v301_v38 = vmul.f32 %v294_v31, %v921_v4  ;;  %482 = vadd.xlane.f32.xlu0 %v481_v33 }
 0x3ee   :  { %v305_v25 = vrot.slane %v304_v28, 4  ;;  %v478_v45 = vsel %vm30_vm1, %v656_v32, 0.0 }
 0x3ef   :  { %v82_v41 = vrot.slane %v81_v36, 2  ;;  %v312_v44 = vsel %vm76_vm8, %v299_v37, 0.0  ;;  %v321_v51 = vsel %vm76_vm8, %v301_v38, 0.0 }
 0x3f0   :  { %v306_v46 = vadd.f32 %v305_v25, %v304_v28  ;;  %v313_v47 = vadd.f32 %v312_v44, %v311_v19  ;;  %v289_v48 = vpop.permute.xlu1 %288 }
 0x3f1   :  { %479 = vadd.xlane.f32.xlu1 %v478_v45  ;;  %v83_v49 = vadd.f32 %v82_v41, %v81_v36  ;;  %v300_v50 = vmul.f32 %v289_v48, %v913_v57 }
 0x3f2   :  { %v314_v52 = vrot.slane %v313_v47, 4  ;;  %v307_v55 = vrot.slane %v306_v46, 2 }
 0x3f3   :  { %v84_v53 = vrot.slane %v83_v49, 1  ;;  %v320_v54 = vsel %vm76_vm8, %v300_v50, 0.0 }
 0x3f4   :  { %v315_v56 = vadd.f32 %v314_v52, %v313_v47  ;;  %v322_v58 = vadd.f32 %v321_v51, %v320_v54  ;;  %v308_v9 = vadd.f32 %v307_v55, %v306_v46 }
 0x3f5   :  { %v85_v60 = vadd.f32 %v84_v53, %v83_v49 }
 0x3f6   :  { %v316_v63 = vrot.slane %v315_v56, 2  ;;  %v323_v0 = vrot.slane %v322_v58, 4  ;;  %v309_v17 = vrot.slane %v308_v9, 1 }
 0x3f7   :  { %v329_v7 = vmax.f32 %v85_v60, 1.0 }
 0x3f8   :  { %v324_v10 = vadd.f32 %v323_v0, %v322_v58  ;;  %v317_v3 = vadd.f32 %v316_v63, %v315_v56  ;;  %v310_v22 = vadd.f32 %v309_v17, %v308_v9 }
 0x3f9   :  { %657 = vrcp.f32 %v329_v7 }
 0x3fa   :  { %v325_v16 = vrot.slane %v324_v10, 2  ;;  %v318_v20 = vrot.slane %v317_v3, 1 }
 0x3fc   :  { %v326_v18 = vadd.f32 %v325_v16, %v324_v10  ;;  %v319_v23 = vadd.f32 %v318_v20, %v317_v3 }
 0x3fe   :  { %v327_v26 = vrot.slane %v326_v18, 1 }
 0x400   :  { %v328_v24 = vadd.f32 %v327_v26, %v326_v18 }
 0x403   :  { %v658_v27 = vpop.eup %657 }
 0x404   :  { %v331_v28 = vmul.f32 %v658_v27, %v310_v22  ;;  %v332_v19 = vmul.f32 %v658_v27, %v319_v23  ;;  %v333_v37 = vmul.f32 %v658_v27, %v328_v24 }
 0x406   :  { %v334_v31 = vmul.f32 %v331_v28, %v913_v57  ;;  %v335_v32 = vmul.f32 %v331_v28, %v921_v4  ;;  %v337_v33 = vmul.f32 %v332_v19, %v921_v4  ;;  %v336_v41 = vmul.f32 %v332_v19, %v913_v57 }
 0x407   :  { %v339_v44 = vmul.f32 %v333_v37, %v921_v4  ;;  %v338_v47 = vmul.f32 %v333_v37, %v913_v57 }
 0x408   :  { %v340_v36 = vsel %vm76_vm8, %v334_v31, 0.0  ;;  %v349_v38 = vsel %vm76_vm8, %v337_v33, 0.0  ;;  %v343_v25 = vsel %vm76_vm8, %v335_v32, 0.0  ;;  %v346_v45 = vsel %vm76_vm8, %v336_v41, 0.0 }
 0x409   :  { %341 = vadd.xlane.f32.xlu1 %v340_v36  ;;  %350 = vadd.xlane.f32.xlu0 %v349_v38  ;;  %v355_v46 = vsel %vm76_vm8, %v339_v44, 0.0  ;;  %v352_v48 = vsel %vm76_vm8, %v338_v47, 0.0 }
 0x40d   :  { %344 = vadd.xlane.f32.xlu1 %v343_v25  ;;  %88 = vadd.xlane.f32.xlu0 %v926_v8 }
 0x411   :  { %347 = vadd.xlane.f32.xlu1 %v346_v45  ;;  %356 = vadd.xlane.f32.xlu0 %v355_v46 }
 0x415   :  { %86 = vadd.xlane.f32.xlu1 %v917_v59 }
 0x419   :  { %353 = vadd.xlane.f32.xlu1 %v352_v48 }
 0x472   :  { %v468_v49 = vpop.xlane.xlu1 %467 }
 0x473   :  { %659 = vlog2.f32 %v468_v49  ;;  %v471_v50 = vpop.xlane.xlu0 %470 }
 0x474   :  { %661 = vlog2.f32 %v471_v50 }
 0x476   :  { %v474_v4 = vpop.xlane.xlu1 %473 }
 0x477   :  { %663 = vlog2.f32 %v474_v4 }
 0x47a   :  { %v477_v51 = vpop.xlane.xlu1 %476  ;;  %v483_v8 = vpop.xlane.xlu0 %482 }
 0x47b   :  { %665 = vlog2.f32 %v477_v51 }
 0x47c   :  { %667 = vlog2.f32 %v483_v8 }
 0x47d   :  { %v660_v52 = vpop.eup %659 }
 0x47e   :  { %v662_v53 = vpop.eup %661  ;;  %v485_v54 = vmul.f32 0.6931472, %v660_v52  ;;  %v480_v57 = vpop.xlane.xlu1 %479 }
 0x47f   :  { %v487_v55 = vmul.f32 0.6931472, %v662_v53  ;;  %669 = vlog2.f32 %v480_v57 }
 0x480   :  { %v496_v59 = vadd.f32 %v485_v54, %v886_v29 }
 0x481   :  { %v664_v56 = vpop.eup %663  ;;  %v497_v58 = vadd.f32 %v487_v55, %v888_v30 }
 0x482   :  { %v489_v60 = vmul.f32 0.6931472, %v664_v56  ;;  %v502_v63 = vsub.f32 %v827_v2, %v496_v59 }
 0x483   :  { %v503_v0 = vsub.f32 %v824_v1, %v497_v58 }
 0x484   :  { %v498_v7 = vadd.f32 %v489_v60, %v894_v34  ;;  %v508_v9 = vmul.f32 %v502_v63, %v744_v42 }
 0x485   :  { %v666_v10 = vpop.eup %665  ;;  %v509_v3 = vmul.f32 %v503_v0, %v749_v43 }
 0x486   :  { %v668_v16 = vpop.eup %667  ;;  %v491_v17 = vmul.f32 0.6931472, %v666_v10  ;;  %v514_v18 = vsel %vm30_vm1, %v508_v9, 0.0  ;;  %v504_v29 = vsub.f32 %v847_v12, %v498_v7 }
 0x487   :  { %v495_v20 = vmul.f32 0.6931472, %v668_v16  ;;  %515 = vadd.xlane.f32.xlu1 %v514_v18  ;;  %v517_v30 = vsel %vm30_vm1, %v509_v3, 0.0 }
 0x488   :  { %v499_v2 = vadd.f32 %v491_v17, %v896_v35  ;;  %518 = vadd.xlane.f32.xlu0 %v517_v30  ;;  %v510_v1 = vmul.f32 %v504_v29, %v744_v42 }
 0x489   :  { %v670_v34 = vpop.eup %669  ;;  %v501_v22 = vadd.f32 %v495_v20, %v904_v40 }
 0x48a   :  { %v493_v23 = vmul.f32 0.6931472, %v670_v34  ;;  %v520_v26 = vsel %vm30_vm1, %v510_v1, 0.0  ;;  %v505_v27 = vsub.f32 %v844_v11, %v499_v2 }
 0x48b   :  { %521 = vadd.xlane.f32.xlu1 %v520_v26  ;;  %v507_v12 = vsub.f32 %v867_v13, %v501_v22 }
 0x48c   :  { %v500_v28 = vadd.f32 %v493_v23, %v902_v39  ;;  %v511_v19 = vmul.f32 %v505_v27, %v749_v43 }
 0x48d   :  { %v513_v31 = vmul.f32 %v507_v12, %v749_v43 }
 0x48e   :  { %v523_v35 = vsel %vm30_vm1, %v511_v19, 0.0  ;;  %v506_v24 = vsub.f32 %v870_v21, %v500_v28 }
 0x48f   :  { %524 = vadd.xlane.f32.xlu0 %v523_v35  ;;  %v529_v11 = vsel %vm30_vm1, %v513_v31, 0.0 }
 0x490   :  { %v512_v40 = vmul.f32 %v506_v24, %v744_v42 }
 0x492   :  { %v526_v32 = vsel %vm30_vm1, %v512_v40, 0.0 }
 0x493   :  { %527 = vadd.xlane.f32.xlu1 %v526_v32  ;;  %530 = vadd.xlane.f32.xlu0 %v529_v11 }
 0x496   :  { %v342_v13 = vpop.xlane.xlu1 %341  ;;  %v351_v36 = vpop.xlane.xlu0 %350 }
 0x497   :  { %v360_v37 = vsub.f32 %v821_v62, %v342_v13  ;;  %v363_v45 = vsub.f32 %v832_v5, %v351_v36 }
 0x49a   :  { %v345_v33 = vpop.xlane.xlu1 %344  ;;  %v89_v43 = vpop.xlane.xlu0 %88 }
 0x49b   :  { %v361_v21 = vsub.f32 %v816_v61, %v345_v33  ;;  %vm359_vm8 = vcmp.gt.f32.partialorder %v89_v43, 0.0 }
 0x49c   :  { %v373_v61 = vsel %vm359_vm8, %v363_v45, 0.0 }
 0x49d   :  { %v371_v25 = vsel %vm359_vm8, %v361_v21, 0.0  ;;  %v385_v59 = vadd.f32 1.0, %v373_v61  ;;  %vm379_vm12 = vcmp.lt.f32.partialorder %v373_v61, 0.0 }
 0x49e   :  { %v348_v39 = vpop.xlane.xlu1 %347  ;;  %v357_v47 = vpop.xlane.xlu0 %356  ;;  %v383_v48 = vadd.f32 1.0, %v371_v25  ;;  %vm377_vm9 = vcmp.lt.f32.partialorder %v371_v25, 0.0 }
 0x49f   :  { %v362_v41 = vsub.f32 %v837_v6, %v348_v39  ;;  %v365_v51 = vsub.f32 %v852_v14, %v357_v47  ;;  %v391_v0 = vsel %vm379_vm12, 1.0, %v385_v59 }
 0x4a0   :  { %v389_v8 = vsel %vm377_vm9, 1.0, %v383_v48 }
 0x4a1   :  { %v375_v58 = vsel %vm359_vm8, %v365_v51, 0.0 }
 0x4a2   :  { %v87_v38 = vpop.xlane.xlu1 %86  ;;  %v387_v10 = vadd.f32 1.0, %v375_v58  ;;  %vm381_vm14 = vcmp.lt.f32.partialorder %v375_v58, 0.0 }
 0x4a3   :  { %vm358_vm7 = vcmp.gt.f32.partialorder %v87_v38, 0.0 }
 0x4a4   :  { %v370_v42 = vsel %vm358_vm7, %v360_v37, 0.0  ;;  %v372_v62 = vsel %vm358_vm7, %v362_v41, 0.0  ;;  %v393_v1 = vsel %vm381_vm14, 1.0, %v387_v10 }
 0x4a5   :  { %v382_v46 = vadd.f32 1.0, %v370_v42  ;;  %vm376_vm1 = vcmp.lt.f32.partialorder %v370_v42, 0.0  ;;  %v384_v53 = vadd.f32 1.0, %v372_v62  ;;  %vm378_vm11 = vcmp.lt.f32.partialorder %v372_v62, 0.0 }
 0x4a6   :  { %v354_v44 = vpop.xlane.xlu1 %353 }
 0x4a7   :  { %v388_v49 = vsel %vm376_vm1, 1.0, %v382_v46  ;;  %v364_v4 = vsub.f32 %v857_v15, %v354_v44  ;;  %v390_v15 = vsel %vm378_vm11, 1.0, %v384_v53 }
 0x4a9   :  { %v374_v56 = vsel %vm358_vm7, %v364_v4, 0.0 }
 0x4aa   :  { %v386_v9 = vadd.f32 1.0, %v374_v56  ;;  %vm380_vm13 = vcmp.lt.f32.partialorder %v374_v56, 0.0 }
 0x4ac   :  { %v392_v30 = vsel %vm380_vm13, 1.0, %v386_v9 }
 0x514   :  { %v516_v50 = vpop.xlane.xlu1 %515 }
 0x515   :  { %v532_v6 = vmul.f32 %v516_v50, %v388_v49  ;;  %v519_v52 = vpop.xlane.xlu0 %518 }
 0x516   :  { %v533_v5 = vmul.f32 %v519_v52, %v389_v8 }
 0x517   :  { %v539_v54 = vsel %vm538_vm10, %v532_v6, 0.0 }
 0x518   :  { %v540_v57 = vsel %vm538_vm10, %v533_v5, 0.0  ;;  %v522_v55 = vpop.xlane.xlu1 %521 }
 0x519   :  { %v541_v60 = vadd.f32 %v540_v57, %v539_v54  ;;  %v534_v63 = vmul.f32 %v522_v55, %v390_v15 }
 0x51b   :  { %v542_v14 = vrot.slane %v541_v60, 4  ;;  %v548_v17 = vsel %vm538_vm10, %v534_v63, 0.0 }
 0x51c   :  { %v525_v7 = vpop.xlane.xlu0 %524 }
 0x51d   :  { %v543_v3 = vadd.f32 %v542_v14, %v541_v60  ;;  %v535_v16 = vmul.f32 %v525_v7, %v391_v0 }
 0x51f   :  { %v549_v18 = vsel %vm538_vm10, %v535_v16, 0.0  ;;  %v544_v29 = vrot.slane %v543_v3, 2 }
 0x520   :  { %v550_v20 = vadd.f32 %v549_v18, %v548_v17  ;;  %v528_v2 = vpop.xlane.xlu1 %527  ;;  %v531_v34 = vpop.xlane.xlu0 %530 }
 0x521   :  { %v536_v22 = vmul.f32 %v528_v2, %v392_v30  ;;  %v537_v23 = vmul.f32 %v531_v34, %v393_v1  ;;  %v545_v28 = vadd.f32 %v544_v29, %v543_v3 }
 0x522   :  { %v551_v26 = vrot.slane %v550_v20, 4 }
 0x523   :  { %v557_v27 = vsel %vm538_vm10, %v536_v22, 0.0  ;;  %v558_v12 = vsel %vm538_vm10, %v537_v23, 0.0  ;;  %v546_v40 = vrot.slane %v545_v28, 1 }
 0x524   :  { %v552_v19 = vadd.f32 %v551_v26, %v550_v20  ;;  %v559_v35 = vadd.f32 %v558_v12, %v557_v27 }
 0x525   :  { %v547_v36 = vadd.f32 %v546_v40, %v545_v28 }
 0x526   :  { %v553_v24 = vrot.slane %v552_v19, 2  ;;  %v560_v31 = vrot.slane %v559_v35, 4 }
 0x527   :  { %v566_v42 = vsel %vm538_vm10, %v547_v36, 0.0 }
 0x528   :  { %v554_v32 = vadd.f32 %v553_v24, %v552_v19  ;;  %v561_v11 = vadd.f32 %v560_v31, %v559_v35 }
 0x52a   :  { %v555_v13 = vrot.slane %v554_v32, 1  ;;  %v562_v33 = vrot.slane %v561_v11, 2 }
 0x52c   :  { %v563_v39 = vadd.f32 %v562_v33, %v561_v11  ;;  %v556_v37 = vadd.f32 %v555_v13, %v554_v32 }
 0x52e   :  { %v564_v38 = vrot.slane %v563_v39, 1  ;;  %v567_v21 = vsel %vm538_vm10, %v556_v37, 0.0 }
 0x52f   :  { %v568_v25 = vadd.f32 %v567_v21, %v566_v42 }
 0x530   :  { %v565_v43 = vadd.f32 %v564_v38, %v563_v39 }
 0x532   :  { %v569_v41 = vsel %vm538_vm10, %v565_v43, 0.0 }
 0x533   :  { %v570_v44 = vadd.f32 %v569_v41, %v568_v25 }
 0x535   :  { %v571_v45 = vmul.f32 -0.0625, %v570_v44 }
 0x537   :  { %578 = vperm.xlu1 %593, %v571_v45  }
 0x5b6   :  { %v579_v46 = vpop.permute.xlu1 %578 }
 0x5b7   :  { %581 = vst.msk [vmem:[%s1009_s3 + $0x3] sm:$0x1] %vm572_vm6, %v579_v46 }

</bundles_post_ra>
